<compile_context>
chip_gen: v7x
topology: tpu7x:2x2x1
jax: 0.10.0
libtpu: 0.0.40
codegen_flags: <defaults>
</compile_context>

<pallas_src>
import jax
import jax.numpy as jnp
from jax.experimental import pallas as pl
from jax.experimental.pallas import tpu as pltpu


# ---------------------------------------------------------------------------
# Kernels
# ---------------------------------------------------------------------------

def ffn_resident_kernel(x_ref, w1_ref, w2_ref, o_ref):
    # x_ref:  (tm, D)        native dtype, one row tile
    # w1_ref: (D, H)   bf16  full weight, VMEM-resident (constant index_map)
    # w2_ref: (H, D)   bf16  full weight, VMEM-resident
    # o_ref:  (tm, D)        output tile
    x = x_ref[...].astype(jnp.bfloat16)
    h = jnp.dot(x, w1_ref[...], preferred_element_type=jnp.float32)
    h = jnp.maximum(h, 0.0).astype(w2_ref.dtype)          # ReLU in f32 -> bf16
    y = jnp.dot(h, w2_ref[...], preferred_element_type=jnp.float32)
    # Dropout is identity in eval/inference mode.
    o_ref[...] = y.astype(o_ref.dtype)


def ffn_streaming_kernel(x_ref, w1_ref, w2_ref, o_ref, acc_ref):
    # x_ref:   (tm, D)        row tile
    # w1_ref:  (D, th)  bf16  hidden chunk of W1_t
    # w2_ref:  (th, D)  bf16  hidden chunk of W2_t
    # o_ref:   (tm, D)        output tile (written on last hidden chunk)
    # acc_ref: (tm, D)  f32   output accumulator (resident across hidden chunks)
    hc = pl.program_id(1)

    @pl.when(hc == 0)
    def _():
        acc_ref[...] = jnp.zeros_like(acc_ref)

    x = x_ref[...].astype(jnp.bfloat16)
    h = jnp.dot(x, w1_ref[...], preferred_element_type=jnp.float32)   # (tm, th)
    h = jnp.maximum(h, 0.0).astype(w2_ref.dtype)
    acc_ref[...] += jnp.dot(h, w2_ref[...], preferred_element_type=jnp.float32)

    @pl.when(hc == pl.num_programs(1) - 1)
    def _():
        # Dropout is identity in eval/inference mode.
        o_ref[...] = acc_ref[...].astype(o_ref.dtype)


# ---------------------------------------------------------------------------
# Wrapper
# ---------------------------------------------------------------------------

def _round_up(a, b):
    return (a + b - 1) // b * b


def _vmem_capacity_bytes():
    try:
        return int(pltpu.get_tpu_info().vmem_capacity_bytes)
    except Exception:
        return 64 * 1024 * 1024          # v7x per-TC size: safe lower bound


def _pick_row_tile():
    """Roofline-tuned default row tile (only matters on the streaming path)."""
    try:
        kind = jax.devices()[0].device_kind.lower()
    except Exception:
        kind = ""
    if "v5" in kind:
        return 256                       # ~240 flop/byte roofline: 256 is enough
    if "v7" in kind or "7x" in kind:
        return 512                       # ~311 flop/byte roofline, 64 MiB VMEM
    return 768                           # v6e (~640 flop/byte) / unknown


def prepare_ffn_weights(w1, w2):
    """One-time parameter conversion from PyTorch nn.Linear layout.

    w1: (H, D) = (4*n_embed, n_embed), w2: (D, H)   (out_features, in_features)
    Returns (W1_t, W2_t) = ((D, H), (H, D)) bf16 — NN-layout, MXU-ready.
    Do this once at parameter-load time, NOT per forward call.
    """
    return (jnp.asarray(w1).T.astype(jnp.bfloat16),
            jnp.asarray(w2).T.astype(jnp.bfloat16))


def feed_forward(x, w1_t, w2_t, *, tm=None, th=512, out_dtype=None):
    """x: (B, T, D).  w1_t: (D, H) bf16, w2_t: (H, D) bf16 (see prepare_ffn_weights).

    tm: row tile (None -> generation-tuned default, balanced & clamped to M).
    th: hidden chunk for the streaming fallback (multiple of 256, divides H)."""
    B, T, D = x.shape
    D1, H = w1_t.shape
    assert D1 == D and w2_t.shape == (H, D), "weights must be pre-transposed (D,H)/(H,D)"

    M = B * T
    out_dtype = out_dtype or x.dtype
    xb = jnp.dtype(x.dtype).itemsize
    ob = jnp.dtype(out_dtype).itemsize

    # ----- row tiling: balanced tiles, >= 2 tiles when possible (v7x megacore) --
    tm_req = tm if tm is not None else _pick_row_tile()
    n_tiles = max(pl.cdiv(M, tm_req), 2)
    tm_eff = _round_up(pl.cdiv(M, n_tiles), 8)
    n_tiles = pl.cdiv(M, tm_eff)
    M_pad = n_tiles * tm_eff

    x2d = x.reshape(M, D)
    if M_pad != M:
        x2d = jnp.pad(x2d, ((0, M_pad - M), (0, 0)))

    # ----- choose path: weights VMEM-resident vs hidden-dim streaming ----------
    w_bytes = D * H * 2                                   # one bf16 weight
    resident_vmem = (2 * tm_eff * D * xb                  # x tile (2 buffers)
                     + 2 * tm_eff * D * ob                # out tile (2 buffers)
                     + 2 * 2 * w_bytes)                   # both weights (assume 2x)
    vmem_cap = _vmem_capacity_bytes()
    resident_budget = min(int(0.75 * vmem_cap), 56 * 1024 * 1024)
    use_resident = resident_vmem <= resident_budget

    flops = 4 * M_pad * D * H                             # two matmuls, 2*M*D*H each

    if use_resident:
        est_vmem = resident_vmem
        cost = pl.CostEstimate(
            flops=flops, transcendentals=0,
            bytes_accessed=int(M_pad * D * (xb + ob) + 2 * w_bytes))
        grid_spec = pltpu.PrefetchScalarGridSpec(
            num_scalar_prefetch=0,
            grid=(n_tiles,),
            in_specs=[
                pl.BlockSpec((tm_eff, D), lambda i: (i, 0)),   # x row tile
                pl.BlockSpec((D, H), lambda i: (0, 0)),        # W1_t, fetched once
                pl.BlockSpec((H, D), lambda i: (0, 0)),        # W2_t, fetched once
            ],
            out_specs=pl.BlockSpec((tm_eff, D), lambda i: (i, 0)),
            scratch_shapes=[],
        )
        kernel = ffn_resident_kernel
        dim_sem = ("parallel",)
    else:
        th_eff = min(th, H)
        assert H % th_eff == 0 and (th_eff == H or th_eff % 256 == 0), \
            "hidden chunk must divide hidden size and be a multiple of 256"
        est_vmem = (2 * tm_eff * D * xb                   # x tile (2 buffers)
                    + 2 * D * th_eff * 2                  # W1_t chunk (2 buffers)
                    + 2 * th_eff * D * 2                  # W2_t chunk (2 buffers)
                    + 2 * tm_eff * D * ob                 # out tile (2 buffers)
                    + tm_eff * D * 4)                     # f32 accumulator
        cost = pl.CostEstimate(
            flops=flops, transcendentals=0,
            bytes_accessed=int(M_pad * D * (xb + ob) + n_tiles * 2 * w_bytes))
        grid_spec = pltpu.PrefetchScalarGridSpec(
            num_scalar_prefetch=0,
            grid=(n_tiles, H // th_eff),
            in_specs=[
                pl.BlockSpec((tm_eff, D), lambda i, h: (i, 0)),    # x row tile
                pl.BlockSpec((D, th_eff), lambda i, h: (0, h)),    # W1_t chunk
                pl.BlockSpec((th_eff, D), lambda i, h: (h, 0)),    # W2_t chunk
            ],
            out_specs=pl.BlockSpec((tm_eff, D), lambda i, h: (i, 0)),
            scratch_shapes=[pltpu.VMEM((tm_eff, D), jnp.float32)],
        )
        kernel = ffn_streaming_kernel
        dim_sem = ("parallel", "arbitrary")

    # est_vmem already counts double buffering -> do NOT double it again.
    vmem_limit = min(max(int(est_vmem) + (2 << 20), 32 << 20), 56 << 20)

    out2d = pl.pallas_call(
        kernel,
        out_shape=jax.ShapeDtypeStruct((M_pad, D), out_dtype),
        grid_spec=grid_spec,
        compiler_params=pltpu.CompilerParams(
            dimension_semantics=dim_sem,
            vmem_limit_bytes=int(vmem_limit),
        ),
        cost_estimate=cost,
    )(x2d, w1_t, w2_t)

    if M_pad != M:
        out2d = out2d[:M]
    return out2d.reshape(B, T, D)


# ---------------------------------------------------------------------------
# Reference (emulates the kernel's bf16-input / f32-accumulate numerics)
# ---------------------------------------------------------------------------

def feed_forward_ref(x, w1, w2):
    xb = x.astype(jnp.bfloat16).astype(jnp.float32)
    w1b = w1.astype(jnp.bfloat16).astype(jnp.float32)
    w2b = w2.astype(jnp.bfloat16).astype(jnp.float32)
    h = jnp.maximum(jnp.einsum("btd,hd->bth", xb, w1b), 0.0)
    h = h.astype(jnp.bfloat16).astype(jnp.float32)
    return jnp.einsum("bth,dh->btd", h, w2b)


if __name__ == "__main__":
    # Config-consistent small shapes: n_embed=128, hidden=4*128=512,
    # batch=2, seq(block_size)=16.
    B, T, D = 2, 16, 128
    H = 4 * D

    key = jax.random.PRNGKey(0)
    kx, k1, k2 = jax.random.split(key, 3)

    x = jax.random.normal(kx, (B, T, D), dtype=jnp.float32)
    # PyTorch-style nn.Linear weights: (out_features, in_features), U(-1/sqrt(fan_in), ...)
    w1 = jax.random.uniform(k1, (H, D), dtype=jnp.float32,
                            minval=-1.0 / (D ** 0.5), maxval=1.0 / (D ** 0.5))
    w2 = jax.random.uniform(k2, (D, H), dtype=jnp.float32,
                            minval=-1.0 / (H ** 0.5), maxval=1.0 / (H ** 0.5))

    # One-time parameter conversion (bf16 + NN layout), then the kernel call.
    w1_t, w2_t = prepare_ffn_weights(w1, w2)
    out = feed_forward(x, w1_t, w2_t)
    out = jax.block_until_ready(out)

    ref = feed_forward_ref(x, w1, w2)
    assert out.shape == (B, T, D)
    assert jnp.allclose(out, ref, atol=1e-2, rtol=1e-2), "mismatch vs reference"

    print("KERNEL_OK")
</pallas_src>

<mosaic_0001>
module attributes {stable_mosaic.version = 11 : i64} {
  func.func @ffn_resident_kernel(%arg0: i32, %arg1: memref<16x128xf32, #tpu.memory_space<vmem>>, %arg2: memref<128x512xbf16, #tpu.memory_space<vmem>>, %arg3: memref<512x128xbf16, #tpu.memory_space<vmem>>, %arg4: memref<16x128xf32, #tpu.memory_space<vmem>>) attributes {dimension_semantics = [#tpu.dimension_semantics<parallel>], iteration_bounds = array<i64: 2>, scalar_prefetch = 0 : i64, scratch_operands = 0 : i64, tpu.core_type = #tpu.core_type<tc>, window_params = [{transform_indices = @transform_0, window_bounds = array<i64: 16, 128>}, {pipeline_mode = #tpu.pipeline_mode<synchronous>, transform_indices = @transform_1, window_bounds = array<i64: 128, 512>}, {pipeline_mode = #tpu.pipeline_mode<synchronous>, transform_indices = @transform_2, window_bounds = array<i64: 512, 128>}, {transform_indices = @transform_3, window_bounds = array<i64: 16, 128>}]} {
    %c0 = arith.constant 0 : index
    %c0_0 = arith.constant 0 : index
    %0 = vector.load %arg1[%c0, %c0_0] : memref<16x128xf32, #tpu.memory_space<vmem>>, vector<16x128xf32>
    %1 = arith.truncf %0 : vector<16x128xf32> to vector<16x128xbf16>
    %c0_1 = arith.constant 0 : index
    %c0_2 = arith.constant 0 : index
    %2 = vector.load %arg2[%c0_1, %c0_2] : memref<128x512xbf16, #tpu.memory_space<vmem>>, vector<128x512xbf16>
    %cst = arith.constant dense<0.000000e+00> : vector<16x512xf32>
    %3 = tpu.matmul %1, %2, %cst {dimension_numbers = #tpu.dot_dimension_numbers<[1], [0], [0], [1], [0, 0, 1, 1], [], []>} : vector<16x128xbf16>, vector<128x512xbf16>, vector<16x512xf32> -> vector<16x512xf32>
    %cst_3 = arith.constant 0.000000e+00 : f32
    %4 = vector.broadcast %cst_3 : f32 to vector<16x512xf32>
    %5 = arith.maximumf %3, %4 : vector<16x512xf32>
    %6 = arith.truncf %5 : vector<16x512xf32> to vector<16x512xbf16>
    %c0_4 = arith.constant 0 : index
    %c0_5 = arith.constant 0 : index
    %7 = vector.load %arg3[%c0_4, %c0_5] : memref<512x128xbf16, #tpu.memory_space<vmem>>, vector<512x128xbf16>
    %cst_6 = arith.constant dense<0.000000e+00> : vector<16x128xf32>
    %8 = tpu.matmul %6, %7, %cst_6 {dimension_numbers = #tpu.dot_dimension_numbers<[1], [0], [0], [1], [0, 0, 1, 1], [], []>} : vector<16x512xbf16>, vector<512x128xbf16>, vector<16x128xf32> -> vector<16x128xf32>
    %c0_7 = arith.constant 0 : index
    %c0_8 = arith.constant 0 : index
    %9 = vector.load %arg4[%c0_7, %c0_8] : memref<16x128xf32, #tpu.memory_space<vmem>>, vector<16x128xf32>
    tpu.vector_store %arg4[%c0_7, %c0_8], %8 {strides = array<i32>} : memref<16x128xf32, #tpu.memory_space<vmem>>, vector<16x128xf32>,
    return
  }
  func.func @transform_0(%arg0: i32) -> (i32, i32) {
    %c0_i32 = arith.constant 0 : i32
    %c0_i32_0 = arith.constant 0 : i32
    return %arg0, %c0_i32 : i32, i32
  }
  func.func @transform_1(%arg0: i32) -> (i32, i32) {
    %c0_i32 = arith.constant 0 : i32
    %c0_i32_0 = arith.constant 0 : i32
    %c0_i32_1 = arith.constant 0 : i32
    return %c0_i32, %c0_i32_0 : i32, i32
  }
  func.func @transform_2(%arg0: i32) -> (i32, i32) {
    %c0_i32 = arith.constant 0 : i32
    %c0_i32_0 = arith.constant 0 : i32
    %c0_i32_1 = arith.constant 0 : i32
    return %c0_i32, %c0_i32_0 : i32, i32
  }
  func.func @transform_3(%arg0: i32) -> (i32, i32) {
    %c0_i32 = arith.constant 0 : i32
    %c0_i32_0 = arith.constant 0 : i32
    return %arg0, %c0_i32 : i32, i32
  }
}

</mosaic_0001>

<bundles_post_ra>
// kernel: tpu_custom_call.1
= control target key start
LH: loop header
LB: loop body
LE: loop exit
PB: predicated region body
PF: predicated region fallthrough
CT: control target
= control target key end

     0   :  { %8 = vsyncpa [#allocation3], 0  ;;  %s1677_s0 = inlined_call_operand.hbm [shape: f32[32,128], index: 0, kind: input, shape index: {}]   ;;  %s1678_s1 = inlined_call_operand.hbm [shape: bf16[128,512], index: 1, kind: input, shape index: {}]   ;;  %s1679_s2 = inlined_call_operand.hbm [shape: bf16[512,128], index: 2, kind: input, shape index: {}]   ;;  %s1680_s3 = inlined_call_operand.hbm [shape: f32[32,128], index: 3, kind: output, shape index: {}]  }
   0x1   :  { %10 = vsyncpa [#allocation3 + $0x1], 0 }
   0x2   :  { %11 = vsyncpa [#allocation6], 0 }
   0x3   :  { %12 = vsyncpa [#allocation4], 0 }
   0x4   :  { %14 = vsyncpa [#allocation4 + $0x1], 0  ;;  %s1435_s12 = smov 0   ;;  %s1437_s13 = smov 0  }
   0x5   :  { %s1439_s14 = smov 0   ;;  %s1441_s15 = smov 0  }
   0x6 LB: > { %s1456_s16 = sadd.s32 4294967295, %s1400_s15   ;;  %s960_s17 = sadd.s32 4294967294, %s1400_s15   ;;  %s1400_s15 = sphi %s1441_s15, %s1700_s15   ;;  %s1396_s14 = sphi %s1439_s14, %s1699_s14   ;;  %s1392_s13 = sphi %s1437_s13, %s1698_s13   ;;  %s1388_s12 = sphi %s1435_s12, %s1697_s12  }
   0x7   : > { %p40_p0 = scmp.ne.s32.totalorder %s1392_s13, %s1388_s12  ;;  %p1681_p1 = scmp.eq.s32.totalorder %s1456_s16, 0 }
   0x8   : > { %p112_p3 = scmp.eq.s32.totalorder %s960_s17, 1  ;;  %p961_p5 = scmp.ge.s32.totalorder %s1400_s15, 1 }
   0x9   : > { %p1465_p4 = por %p1681_p1, %p40_p0  ;;  %p119_p7 = scmp.lt.s32.totalorder %s1400_s15, 3 }
   0xa   : > { %p1470_p6 = por %p112_p3, %p40_p0  ;;  %s1402_s21 = smov [#allocation5]  }
   0xb   : > { %s1684_s18 = scalar_select %p1465_p4, 1, 0 }
   0xc   : > { %s1685_s19 = scalar_select %p1470_p6, 1, 0 }
   0xd   : > { %p1475_p8 = pnand %p961_p5, %p119_p7  ;;  %s131_s22 = sshll.u32 %s1402_s21, 4  ;;  %s1479_s22 = int_to_ptr.vmem [resolvable:$true] %s131_s22 }
   0xe   : > { %s1403_s24 = smov [#allocation7]   ;;  %s1244_s28 = scalar_lea.hbm %s1678_s1, 4096 }
   0xf   : > { %p1100_p9 = pneg %p1475_p8  ;;  %s144_s25 = sshll.u32 %s1403_s24, 4  ;;  %s1490_s25 = int_to_ptr.vmem [resolvable:$true] %s144_s25 }
  0x10   : > { %p1245_p12 = scmp.ne.s32.totalorder %s1678_s1, %s1244_s28  ;;  %p1251_p5 = scmp.lt.u32.totalorder %s1244_s28, %s1678_s1 }
  0x11   : > { %p1486_p11 = pnand %p1100_p9, %p1681_p1 }
  0x13   : > { %p1246_p13 = pneg %p1486_p11 }
  0x15   : > { %p1247_p0 = pnand %p1246_p13, %p1245_p12 }
  0x17   : > { %p1248_p3 = pneg %p1247_p0 }
  0x19   : > { %p1253_p7 = pnand %p1251_p5, %p1248_p3 }
  0x1b   : > { %1256 = shalt.err (!%p1253_p7)
}
  0x1c   : > { %s1257_s6 = scalar_lea.vmem %s1479_s22, 4096  ;;  %p1265_p2 = scmp.lt.s32.totalorder %s1479_s22, %s1479_s22 }
  0x1d   : > { %p1258_p9 = scmp.ne.s32.totalorder %s1479_s22, %s1257_s6  ;;  %p1266_p12 = scmp.lt.s32.totalorder %s1257_s6, %s1257_s6 }
  0x1f   : > { %p1260_p10 = pnand %p1258_p9, %p1246_p13  ;;  %p1267_p0 = por %p1266_p12, %p1265_p2 }
  0x21   : > { %p1261_p1 = pneg %p1260_p10 }
  0x23   : > { %p1268_p6 = pnand %p1267_p0, %p1261_p1 }
  0x25   : > { %1271 = shalt.err (!%p1268_p6)
}
  0x26   : > { %s1404_s7 = smov 256   ;;  %s1405_s8 = smov 16  }
  0x27   : > { %1103 = dma.hbm_to_vmem [thread:$0]  (!%p1486_p11), %s1678_s1, 4096, %s1479_s22, [#allocation6], %s1404_s7, %s1404_s7, %s1405_s8  }
  0x28   : > { %s1272_s21 = scalar_lea.hbm %s1679_s2, 4096 }
  0x29   : > { %p1273_p2 = scmp.ne.s32.totalorder %s1679_s2, %s1272_s21  ;;  %p1279_p10 = scmp.lt.u32.totalorder %s1272_s21, %s1679_s2 }
  0x2b   : > { %p1275_p1 = pnand %p1273_p2, %p1246_p13 }
  0x2d   : > { %p1276_p6 = pneg %p1275_p1 }
  0x2f   : > { %p1281_p3 = pnand %p1279_p10, %p1276_p6 }
  0x31   : > { %1284 = shalt.err (!%p1281_p3)
}
  0x32   : > { %s1285_s22 = scalar_lea.vmem %s1490_s25, 4096  ;;  %p1293_p12 = scmp.lt.s32.totalorder %s1490_s25, %s1490_s25 }
  0x33   : > { %p1286_p5 = scmp.ne.s32.totalorder %s1490_s25, %s1285_s22  ;;  %p1294_p0 = scmp.lt.s32.totalorder %s1285_s22, %s1285_s22 }
  0x35   : > { %p1288_p7 = pnand %p1286_p5, %p1246_p13  ;;  %p1295_p2 = por %p1294_p0, %p1293_p12 }
  0x37   : > { %p1289_p9 = pneg %p1288_p7 }
  0x39   : > { %p1296_p1 = pnand %p1295_p2, %p1289_p9 }
  0x3b   : > { %1299 = shalt.err (!%p1296_p1)
}
  0x3c   : > { %s1406_s29 = smov 64   ;;  %s1407_s30 = smov 4  }
  0x3d   : > { %1106 = dma.hbm_to_vmem [thread:$0]  (!%p1486_p11), %s1679_s2, 4096, %s1490_s25, [#allocation6], %s1406_s29, %s1406_s29, %s1407_s30  }
  0x3e   : > { %s1545_s6 = sadd.s32 1, %s1400_s15   ;;  %s27_s8 = sadd.s32 1, %s1396_s14 }
  0x3f   : > { %s24_s7 = ssub.s32 %s1400_s15, %s1545_s6  ;;  %p34_p6 = scmp.ne.s32.totalorder %s1396_s14, %s1392_s13 }
  0x40   : > { %p25_p13 = scmp.eq.s32.totalorder %s24_s7, 0  ;;  %p35_p10 = scmp.eq.s32.totalorder %s1400_s15, 0 }
  0x41   : > { %p1688_p5 = scmp.eq.s32.totalorder %s1456_s16, 1  ;;  %p1117_p9 = scmp.lt.s32.totalorder %s1400_s15, 2 }
  0x42   : > { %s1554_s9 = scalar_select %p25_p13, %s1396_s14, %s27_s8  }
  0x43   : > { %p36_p3 = por %p35_p10, %p34_p6  ;;  %p1558_p7 = por %p1688_p5, %p34_p6 }
  0x44   : > { %s158_s23 = sand.u32 1, %s1396_s14   ;;  %s1042_s25 = sshll.u32 %s1400_s15, 8 }
  0x45   : > { %s1689_s10 = scalar_select %p1558_p7, 1, 0 }
  0x46   : > { %s965_s11 = sshll.u32 %s158_s23, 4  ;;  %s1568_s24 = scalar_lea.hbm %s1677_s0, %s1042_s25 }
  0x47   : > { %s162_s26 = scalar_lea.vmem [#allocation2], %s965_s11  ;;  %p1572_p11 = pnand %p1117_p9, %p36_p3 }
  0x48   : > { %s169_s27 = sshll.u32 %s162_s26, 4  ;;  %s1576_s22 = scalar_lea.sflag [#allocation3], %s158_s23  ;;  %s1570_s27 = int_to_ptr.vmem [resolvable:$true] %s169_s27 }
  0x49   : > { %s1300_s29 = scalar_lea.hbm %s1568_s24, 256  ;;  %p1302_p0 = pneg %p1572_p11 }
  0x4a   : > { %p1301_p12 = scmp.ne.s32.totalorder %s1568_s24, %s1300_s29  ;;  %s1305_s5 = scalar_lea.hbm %s1677_s0, 512 }
  0x4b   : > { %p1306_p13 = scmp.lt.u32.totalorder %s1568_s24, %s1677_s0  ;;  %p1307_p6 = scmp.lt.u32.totalorder %s1305_s5, %s1300_s29 }
  0x4c   : > { %p1303_p2 = pnand %p1302_p0, %p1301_p12  ;;  %p1309_p3 = scmp.lt.u32.totalorder %s1300_s29, %s1568_s24 }
  0x4d   : > { %p1308_p10 = por %p1307_p6, %p1306_p13 }
  0x4e   : > { %p1304_p1 = pneg %p1303_p2 }
  0x4f   : > { %p1310_p5 = por %p1309_p3, %p1308_p10 }
  0x51   : > { %p1311_p9 = pnand %p1310_p5, %p1304_p1 }
  0x53   : > { %1314 = shalt.err (!%p1311_p9)
}
  0x54   : > { %s1315_s23 = scalar_lea.vmem %s1570_s27, 256  ;;  %s1408_s11 = smov [#allocation2]  }
  0x55   : > { %p1316_p12 = scmp.ne.s32.totalorder %s1570_s27, %s1315_s23  ;;  %s1320_s25 = sshll.u32 %s1408_s11, 4  ;;  %s1321_s25 = int_to_ptr.vmem [resolvable:$false] %s1320_s25 }
  0x56   : > { %s1322_s17 = scalar_lea.vmem %s1321_s25, 512  ;;  %p1323_p4 = scmp.lt.s32.totalorder %s1570_s27, %s1321_s25 }
  0x57   : > { %p1318_p2 = pnand %p1316_p12, %p1302_p0  ;;  %p1324_p13 = scmp.lt.s32.totalorder %s1322_s17, %s1315_s23 }
  0x59   : > { %p1319_p7 = pneg %p1318_p2  ;;  %p1325_p6 = por %p1324_p13, %p1323_p4 }
  0x5b   : > { %p1326_p10 = pnand %p1325_p6, %p1319_p7 }
  0x5d   : > { %1329 = shalt.err (!%p1326_p10)
}
  0x5e   : > { %s1409_s21 = smov 128   ;;  %s1410_s26 = smov 8  }
  0x5f   : > { %1110 = dma.hbm_to_vmem [thread:$0]  (!%p1572_p11), %s1568_s24, 256, %s1570_s27, %s1576_s22, %s1409_s21, %s1409_s21, %s1410_s26  }
  0x60   : > { %181 = sbr.rel (%p1475_p8) target bundleno = 595 (0x253), region = 32  ;;  %s1607_s29 = sand.u32 (!%p1475_p8), 1, %s1392_s13  }
  0x61   : > { %s969_s30 = sshll.u32 (!%p1475_p8), %s1607_s29, 4  ;;  %s184_s4 = scalar_lea.sflag (!%p1475_p8), [#allocation3], %s1607_s29 }
  0x62   : > { %s1613_s5 = scalar_lea.vmem (!%p1475_p8), [#allocation2], %s969_s30  ;;  %p1691_p4 = scmp.ne.s32.totalorder (!%p1475_p8), %s1684_s18, 0 }
  0x67   : > { %1375 = dma.done.wait (%p1691_p4), %s184_s4, 256  }
  0x68   : > { %1377 = vsyncadd (%p1691_p4), %s184_s4, 4294967040  ;;  %p1692_p7 = scmp.eq.s32.totalorder %s1456_s16, 0 }
  0x6a   : > { %1379 = dma.done.wait (%p1692_p7), [#allocation6], 8192   ;;  %p1693_p8 = pmov %p1692_p7 }
  0x6b   : > { %v1411_v0 = vmov 0   ;;  %v1164_v1 = vld [vmem:[#allocation5 + $0x4] ss:$16 sps:$4 sm:$0xff]   ;;  %v1166_v2 = vld [vmem:[#allocation5 + $0xc] ss:$16 sps:$4 sm:$0xff]   ;;  %s217_s18 = scalar_lea.vmem [#allocation8], %s969_s30 }
  0x6c   : > { %1381 = vsyncadd (%p1693_p8), [#allocation6], 4294959104  ;;  %448 = vmatprep.mubr.bf16.mxu0 %v1411_v0  ;;  %491 = vmatprep.mubr.bf16.mxu1 %v1411_v0  ;;  %v1168_v3 = vld [vmem:[#allocation5] ss:$16 sps:$4 sm:$0xff]   ;;  %v1169_v4 = vld [vmem:[#allocation5 + $0x8] ss:$16 sps:$4 sm:$0xff]  }
  0x6d   : > { %416 = vmatprep.subr.bf16.mxu0 %v1164_v1  ;;  %459 = vmatprep.subr.bf16.mxu1 %v1166_v2  ;;  %v1170_v5 = vld [vmem:[#allocation5 + $0x24] ss:$16 sps:$4 sm:$0xff]   ;;  %v1172_v6 = vld [vmem:[#allocation5 + $0x2c] ss:$16 sps:$4 sm:$0xff]   ;;  %v1174_v7 = vld [vmem:[#allocation5 + $0x20] ss:$16 sps:$4 sm:$0xff]  }
  0x6e   : > { %417 = vmatpush1.bf16.msra.mxu0 %v1168_v3  ;;  %460 = vmatpush1.bf16.msra.mxu1 %v1169_v4  ;;  %v1175_v8 = vld [vmem:[#allocation5 + $0x28] ss:$16 sps:$4 sm:$0xff]   ;;  %v1176_v9 = vld [vmem:[#allocation5 + $0x44] ss:$16 sps:$4 sm:$0xff]   ;;  %v1178_v10 = vld [vmem:[#allocation5 + $0x4c] ss:$16 sps:$4 sm:$0xff]  }
  0x6f   : > { %418 = vmatprep.subr.bf16.mxu0 %v1170_v5  ;;  %461 = vmatprep.subr.bf16.mxu1 %v1172_v6  ;;  %v1180_v11 = vld [vmem:[#allocation5 + $0x40] ss:$16 sps:$4 sm:$0xff]   ;;  %v1181_v12 = vld [vmem:[#allocation5 + $0x48] ss:$16 sps:$4 sm:$0xff]   ;;  %v1182_v13 = vld [vmem:[#allocation5 + $0x64] ss:$16 sps:$4 sm:$0xff]  }
  0x70   : > { %v1184_v14 = vld [vmem:[#allocation5 + $0x6c] ss:$16 sps:$4 sm:$0xff]   ;;  %v1186_v15 = vld [vmem:[#allocation5 + $0x60] ss:$16 sps:$4 sm:$0xff]   ;;  %v1187_v16 = vld [vmem:[#allocation5 + $0x68] ss:$16 sps:$4 sm:$0xff]  }
  0x71   : > { %v1188_v17 = vld [vmem:[#allocation5 + $0x84] ss:$16 sps:$4 sm:$0xff]   ;;  %v1190_v18 = vld [vmem:[#allocation5 + $0x8c] ss:$16 sps:$4 sm:$0xff]   ;;  %v1192_v19 = vld [vmem:[#allocation5 + $0x80] ss:$16 sps:$4 sm:$0xff]  }
  0x72   : > { %419 = vmatpush1.bf16.msra.mxu0 %v1174_v7  ;;  %462 = vmatpush1.bf16.msra.mxu1 %v1175_v8  ;;  %v1193_v20 = vld [vmem:[#allocation5 + $0x88] ss:$16 sps:$4 sm:$0xff]   ;;  %v1194_v21 = vld [vmem:[#allocation5 + $0xa4] ss:$16 sps:$4 sm:$0xff]   ;;  %v1196_v22 = vld [vmem:[#allocation5 + $0xac] ss:$16 sps:$4 sm:$0xff]  }
  0x73   : > { %420 = vmatprep.subr.bf16.mxu0 %v1176_v9  ;;  %463 = vmatprep.subr.bf16.mxu1 %v1178_v10  ;;  %v1198_v23 = vld [vmem:[#allocation5 + $0xa0] ss:$16 sps:$4 sm:$0xff]   ;;  %v1199_v24 = vld [vmem:[#allocation5 + $0xa8] ss:$16 sps:$4 sm:$0xff]   ;;  %v1200_v25 = vld [vmem:[#allocation5 + $0xc4] ss:$16 sps:$4 sm:$0xff]  }
  0x74   : > { %v1202_v26 = vld [vmem:[#allocation5 + $0xcc] ss:$16 sps:$4 sm:$0xff]   ;;  %v1204_v27 = vld [vmem:[#allocation5 + $0xc0] ss:$16 sps:$4 sm:$0xff]   ;;  %v1205_v28 = vld [vmem:[#allocation5 + $0xc8] ss:$16 sps:$4 sm:$0xff]  }
  0x75   : > { %v1206_v29 = vld [vmem:[#allocation5 + $0xe4] ss:$16 sps:$4 sm:$0xff]   ;;  %v1208_v30 = vld [vmem:[#allocation5 + $0xec] ss:$16 sps:$4 sm:$0xff]   ;;  %v1210_v31 = vld [vmem:[#allocation5 + $0xe0] ss:$16 sps:$4 sm:$0xff]  }
  0x76   : > { %421 = vmatpush1.bf16.msra.mxu0 %v1180_v11  ;;  %464 = vmatpush1.bf16.msra.mxu1 %v1181_v12  ;;  %v1211_v32 = vld [vmem:[#allocation5 + $0xe8] ss:$16 sps:$4 sm:$0xff]   ;;  %v221_v33 = vld [vmem:[%s1613_s5] sm:$0xff]  ;;  %s868_s20 = sshll.u32 %s217_s18, 4  ;;  %s1043_s24 = sshll.u32 %s1456_s16, 8  ;;  %s1628_s20 = int_to_ptr.vmem [resolvable:$true] %s868_s20 }
  0x77   : > { %422 = vmatprep.subr.bf16.mxu0 %v1182_v13  ;;  %465 = vmatprep.subr.bf16.mxu1 %v1184_v14  ;;  %v222_v34 = vld [vmem:[%s1613_s5 + $0x8] sm:$0xff]  ;;  %v1212_v35 = vld [vmem:[#allocation7 + $0x40] sm:$0xff]   ;;  %v1220_v44 = vld [vmem:[#allocation7 + $0x50] sm:$0xff]   ;;  %s1633_s22 = scalar_lea.hbm %s1680_s3, %s1043_s24  ;;  %s855_s7 = scalar_lea.sflag [#allocation4], %s1607_s29 }
  0x78   : > { %v1213_v36 = vld [vmem:[#allocation7 + $0xc0] sm:$0xff]   ;;  %v223_v38 = vpack.c.bf16 %v222_v34, %v221_v33  ;;  %v1216_v40 = vld [vmem:[#allocation7 + $0x48] sm:$0xff]   ;;  %v1221_v45 = vld [vmem:[#allocation7 + $0xd0] sm:$0xff]   ;;  %s1330_s16 = scalar_lea.vmem %s1628_s20, 256  ;;  %p1694_p0 = scmp.ne.s32.totalorder %s1689_s10, 0 }
  0x79   : > { %v1214_v37 = vld [vmem:[#allocation7] sm:$0xff]   ;;  %v1217_v41 = vld [vmem:[#allocation7 + $0xc8] sm:$0xff]   ;;  %v1222_v46 = vld [vmem:[#allocation7 + $0x10] sm:$0xff]   ;;  %p1331_p11 = scmp.ne.s32.totalorder %s1628_s20, %s1330_s16  ;;  %s1412_s8 = smov [#allocation8]  }
  0x7a   : > { %423 = vmatpush1.bf16.msra.mxu0 %v1186_v15  ;;  %466 = vmatpush1.bf16.msra.mxu1 %v1187_v16  ;;  %v1215_v39 = vld [vmem:[#allocation7 + $0x80] sm:$0xff]   ;;  %v1218_v42 = vld [vmem:[#allocation7 + $0x8] sm:$0xff]   ;;  %v1223_v47 = vld [vmem:[#allocation7 + $0x90] sm:$0xff]   ;;  %s1334_s23 = sshll.u32 %s1412_s8, 4  ;;  %s1335_s23 = int_to_ptr.vmem [resolvable:$false] %s1334_s23 }
  0x7b   : > { %424 = vmatprep.subr.bf16.mxu0 %v1188_v17  ;;  %467 = vmatprep.subr.bf16.mxu1 %v1190_v18  ;;  %v1219_v43 = vld [vmem:[#allocation7 + $0x88] sm:$0xff]   ;;  %v1224_v48 = vld [vmem:[#allocation7 + $0x58] sm:$0xff]   ;;  %v1228_v52 = vld [vmem:[#allocation7 + $0x60] sm:$0xff]   ;;  %p1332_p1 = pnand %p1331_p11, %p1694_p0  ;;  %s1336_s11 = scalar_lea.vmem %s1335_s23, 512 }
  0x7c   : > { %v1225_v49 = vld [vmem:[#allocation7 + $0xd8] sm:$0xff]   ;;  %v1229_v53 = vld [vmem:[#allocation7 + $0xe0] sm:$0xff]   ;;  %v1232_v56 = vld [vmem:[#allocation7 + $0x68] sm:$0xff]   ;;  %p1337_p5 = scmp.lt.s32.totalorder %s1628_s20, %s1335_s23  ;;  %p1338_p9 = scmp.lt.s32.totalorder %s1336_s11, %s1330_s16 }
  0x7d   : > { %v1226_v50 = vld [vmem:[#allocation7 + $0x18] sm:$0xff]   ;;  %v1230_v54 = vld [vmem:[#allocation7 + $0x20] sm:$0xff]   ;;  %v1233_v57 = vld [vmem:[#allocation7 + $0xe8] sm:$0xff]   ;;  %p1333_p3 = pneg %p1332_p1 }
  0x7e   : > { %425 = vmatpush1.bf16.msra.mxu0 %v1192_v19  ;;  %468 = vmatpush1.bf16.msra.mxu1 %v1193_v20  ;;  %v1227_v51 = vld [vmem:[#allocation7 + $0x98] sm:$0xff]   ;;  %v1231_v55 = vld [vmem:[#allocation7 + $0xa0] sm:$0xff]   ;;  %v1234_v58 = vld [vmem:[#allocation7 + $0x28] sm:$0xff]   ;;  %p1339_p12 = por %p1338_p9, %p1337_p5 }
  0x7f   : > { %426 = vmatprep.subr.bf16.mxu0 %v1194_v21  ;;  %469 = vmatprep.subr.bf16.mxu1 %v1196_v22  ;;  %v1235_v59 = vld [vmem:[#allocation7 + $0xa8] sm:$0xff]   ;;  %v1236_v60 = vld [vmem:[#allocation7 + $0x70] sm:$0xff]   ;;  %v1240_v0 = vld [vmem:[#allocation7 + $0x78] sm:$0xff]  }
  0x80   : > { %v1237_v61 = vld [vmem:[#allocation7 + $0xf0] sm:$0xff]   ;;  %v1241_v1 = vld [vmem:[#allocation7 + $0xf8] sm:$0xff]   ;;  %p1340_p2 = pnand %p1339_p12, %p1333_p3 }
  0x81   : > { %v1238_v62 = vld [vmem:[#allocation7 + $0x30] sm:$0xff]   ;;  %v1242_v2 = vld [vmem:[#allocation7 + $0x38] sm:$0xff]  }
  0x82   : > { %427 = vmatpush1.bf16.msra.mxu0 %v1198_v23  ;;  %470 = vmatpush1.bf16.msra.mxu1 %v1199_v24  ;;  %v1239_v63 = vld [vmem:[#allocation7 + $0xb0] sm:$0xff]   ;;  %v1243_v3 = vld [vmem:[#allocation7 + $0xb8] sm:$0xff]  }
  0x83   : > { %428 = vmatprep.subr.bf16.mxu0 %v1200_v25  ;;  %471 = vmatprep.subr.bf16.mxu1 %v1202_v26 }
  0x86   : > { %429 = vmatpush1.bf16.msra.mxu0 %v1204_v27  ;;  %472 = vmatpush1.bf16.msra.mxu1 %v1205_v28 }
  0x87   : > { %430 = vmatprep.subr.bf16.mxu0 %v1206_v29  ;;  %473 = vmatprep.subr.bf16.mxu1 %v1208_v30 }
  0x8a   : > { %431 = vmatpush1.bf16.msra.mxu0 %v1210_v31  ;;  %474 = vmatpush1.bf16.msra.mxu1 %v1211_v32 }
  0x8b   : > { %1044 = vmatprep.subr.bf16.mxu0 %v1212_v35  ;;  %1066 = vmatprep.subr.bf16.mxu1 %v1213_v36 }
  0x8d   : > { %449 = vmatmul.mubr.bf16.vlgmr.msra.gmra.mrb[0].mxu0 %v223_v38  ;;  %492 = vmatmul.mubr.bf16.vlgmr.msra.gmra.mrb[0].mxu1 %v223_v38 }
  0x8e   : > { %1045 = vmatpush3.bf16.msra.mxu0 %v1214_v37  ;;  %1067 = vmatpush3.bf16.msra.mxu1 %v1215_v39 }
  0x8f   : > { %1046 = vmatprep.subr.bf16.mxu0 %v1216_v40  ;;  %1068 = vmatprep.subr.bf16.mxu1 %v1217_v41 }
  0x92   : > { %1047 = vmatpush3.bf16.msra.mxu0 %v1218_v42  ;;  %1069 = vmatpush3.bf16.msra.mxu1 %v1219_v43 }
  0x93   : > { %1048 = vmatprep.subr.bf16.mxu0 %v1220_v44  ;;  %1070 = vmatprep.subr.bf16.mxu1 %v1221_v45 }
  0x96   : > { %1049 = vmatpush3.bf16.msra.mxu0 %v1222_v46  ;;  %1071 = vmatpush3.bf16.msra.mxu1 %v1223_v47 }
  0x97   : > { %1050 = vmatprep.subr.bf16.mxu0 %v1224_v48  ;;  %1072 = vmatprep.subr.bf16.mxu1 %v1225_v49 }
  0x9a   : > { %1051 = vmatpush3.bf16.msra.mxu0 %v1226_v50  ;;  %1073 = vmatpush3.bf16.msra.mxu1 %v1227_v51 }
  0x9b   : > { %1052 = vmatprep.subr.bf16.mxu0 %v1228_v52  ;;  %1074 = vmatprep.subr.bf16.mxu1 %v1229_v53 }
  0x9e   : > { %1053 = vmatpush3.bf16.msra.mxu0 %v1230_v54  ;;  %1075 = vmatpush3.bf16.msra.mxu1 %v1231_v55 }
  0x9f   : > { %1054 = vmatprep.subr.bf16.mxu0 %v1232_v56  ;;  %1076 = vmatprep.subr.bf16.mxu1 %v1233_v57 }
  0xa2   : > { %1055 = vmatpush3.bf16.msra.mxu0 %v1234_v58  ;;  %1077 = vmatpush3.bf16.msra.mxu1 %v1235_v59 }
  0xa3   : > { %1056 = vmatprep.subr.bf16.mxu0 %v1236_v60  ;;  %1078 = vmatprep.subr.bf16.mxu1 %v1237_v61 }
  0xa6   : > { %1057 = vmatpush3.bf16.msra.mxu0 %v1238_v62  ;;  %1079 = vmatpush3.bf16.msra.mxu1 %v1239_v63 }
  0xa7   : > { %1058 = vmatprep.subr.bf16.mxu0 %v1240_v0  ;;  %1080 = vmatprep.subr.bf16.mxu1 %v1241_v1 }
  0xaa   : > { %1059 = vmatpush3.bf16.msra.mxu0 %v1242_v2  ;;  %1081 = vmatpush3.bf16.msra.mxu1 %v1243_v3 }
 0x160   : > { %v450_v4 = vpop.f32.mrb[0].mxu0  ;;  %v493_v5 = vpop.f32.mrb[0].mxu1 }
 0x161   : > { %v452_v6 = vpop.f32.mrb[1].mxu0  ;;  %v495_v7 = vpop.f32.mrb[1].mxu1  ;;  %v502_v10 = vmax.f32 %v450_v4, 0.0  ;;  %v504_v11 = vmax.f32 %v493_v5, 0.0 }
 0x162   : > { %v454_v8 = vpop.f32.mrb[2].mxu0  ;;  %v497_v9 = vpop.f32.mrb[2].mxu1  ;;  %v503_v16 = vmax.f32 %v452_v6, 0.0  ;;  %v505_v17 = vmax.f32 %v495_v7, 0.0 }
 0x163   : > { %v506_v12 = vmax.f32 %v454_v8, 0.0  ;;  %v508_v13 = vmax.f32 %v497_v9, 0.0  ;;  %v456_v14 = vpop.f32.mrb[3].mxu0  ;;  %v499_v15 = vpop.f32.mrb[3].mxu1 }
 0x164   : > { %v507_v18 = vmax.f32 %v456_v14, 0.0  ;;  %v509_v19 = vmax.f32 %v499_v15, 0.0 }
 0x165   : > { %v510_v20 = vpack.c.bf16 %v506_v12, %v502_v10  ;;  %v512_v21 = vpack.c.bf16 %v508_v13, %v504_v11 }
 0x166   : > { %v511_v22 = vpack.c.bf16 %v507_v18, %v503_v16  ;;  %v513_v23 = vpack.c.bf16 %v509_v19, %v505_v17 }
 0x168   : > { %802 = vmatprep.mubr.bf16.mxu0 %v511_v22  ;;  %843 = vmatprep.mubr.bf16.mxu1 %v513_v23 }
 0x169   : > { %803 = vmatmul.mubr.bf16.vlgmr.msra.gmra.mrb[4].mxu0 %v510_v20  ;;  %844 = vmatmul.mubr.bf16.vlgmr.msra.gmra.mrb[4].mxu1 %v512_v21 }
 0x23c   : > { %v1060_v24 = vpop.f32.mrb[4].mxu0  ;;  %v1082_v25 = vpop.f32.mrb[4].mxu1 }
 0x23d   : > { %v1061_v26 = vpop.f32.mrb[5].mxu0  ;;  %v1083_v27 = vpop.f32.mrb[5].mxu1 }
 0x23e   : > { %v1062_v28 = vadd.f32 %v1061_v26, %v1060_v24  ;;  %v1084_v29 = vadd.f32 %v1083_v27, %v1082_v25  ;;  %v1063_v30 = vpop.f32.mrb[6].mxu0  ;;  %v1085_v31 = vpop.f32.mrb[6].mxu1 }
 0x23f   : > { %v1064_v32 = vpop.f32.mrb[7].mxu0  ;;  %v1086_v33 = vpop.f32.mrb[7].mxu1 }
 0x240   : > { %v846_v34 = vadd.f32 %v1084_v29, %v1062_v28  ;;  %v1065_v35 = vadd.f32 %v1064_v32, %v1063_v30  ;;  %v1087_v36 = vadd.f32 %v1086_v33, %v1085_v31 }
 0x242   : > { %852 = vst [vmem:[%s217_s18] sm:$0xff] %v846_v34  ;;  %v849_v37 = vadd.f32 %v1087_v36, %v1065_v35 }
 0x244   : > { %853 = vst [vmem:[%s217_s18 + $0x8] sm:$0xff] %v849_v37 }
 0x245   : > { %1343 = shalt.err (!%p1340_p2)
}
 0x246   : > { %s1344_s25 = scalar_lea.hbm %s1633_s22, 256  ;;  %s1348_s26 = scalar_lea.hbm %s1680_s3, 512 }
 0x247   : > { %p1345_p13 = scmp.ne.s32.totalorder %s1633_s22, %s1344_s25  ;;  %p1349_p4 = scmp.lt.u32.totalorder %s1633_s22, %s1680_s3 }
 0x248   : > { %p1350_p7 = scmp.lt.u32.totalorder %s1348_s26, %s1344_s25  ;;  %p1352_p11 = scmp.lt.u32.totalorder %s1344_s25, %s1633_s22 }
 0x249   : > { %p1346_p6 = pnand %p1345_p13, %p1694_p0 }
 0x24a   : > { %p1351_p8 = por %p1350_p7, %p1349_p4 }
 0x24b   : > { %p1347_p10 = pneg %p1346_p6 }
 0x24c   : > { %p1353_p1 = por %p1352_p11, %p1351_p8 }
 0x24e   : > { %p1354_p3 = pnand %p1353_p1, %p1347_p10 }
 0x250   : > { %1357 = shalt.err (!%p1354_p3)
}
 0x251   : > { %s1413_s5 = smov 128   ;;  %s1414_s18 = smov 8  }
 0x252   : > { %1098 = dma.vmem_to_hbm [thread:$0]  (%p1694_p0), %s1628_s20, 256, %s1633_s22, %s855_s7, %s1413_s5, %s1413_s5, %s1414_s18  }
 0x253 PF: > { %s883_s24 = sand.u32 1, %s1388_s12   ;;  %p1695_p5 = scmp.ne.s32.totalorder %s1685_s19, 0 }
 0x254   : > { %p1696_p9 = scmp.ge.s32.totalorder %s1400_s15, 2  ;;  %s884_s27 = scalar_lea.sflag [#allocation4], %s883_s24 }
 0x256   : > { %p1112_p12 = pnand %p1696_p9, %p1695_p5 }
 0x258   : > { %1383 = dma.done.wait (!%p1112_p12), %s884_s27, 256  }
 0x259   : > { %1385 = vsyncadd (!%p1112_p12), %s884_s27, 4294967040  ;;  %p17_p2 = scmp.ge.s32.totalorder %s1545_s6, 4   ;;  %s1697_s12 = smov %s1392_s13 }
 0x25a   : > { %s1698_s13 = smov %s1396_s14  ;;  %s1699_s14 = smov %s1554_s9 }
 0x25b   : > { %s1700_s15 = smov %s1545_s6  ;;  %19 = sbr.rel (!%p17_p2) target bundleno = 6 (0x6), region = 85 }
 0x262   :  { %889 = vsyncpa [#allocation3], 1 }
 0x263   :  { %891 = vsyncpa [#allocation3 + $0x1], 1 }
 0x264   :  { %892 = vsyncpa [#allocation6], 1 }
 0x265   :  { %893 = vsyncpa [#allocation4], 1 }
 0x266   :  { %895 = vsyncpa [#allocation4 + $0x1], 1 }

</bundles_post_ra>
